<compile_context>
chip_gen: v7x
topology: tpu7x:2x2x1
jax: 0.10.0
libtpu: 0.0.40
codegen_flags: <defaults>
</compile_context>

<pallas_src>
import functools

import jax
import jax.numpy as jnp
from jax.experimental import pallas as pl
from jax.experimental.pallas import tpu as pltpu

_LANE = 128


def _ppo_loss_kernel(new_lp_ref, old_lp_ref, ent_ref, adv_ref,     # (tr, 128)
                     new_v_ref, old_v_ref, ret_ref,                # (1, B)
                     out_ref,                                      # (1, 5, 8, 128)
                     *, cliprange, rows, nb, spc):
    c = pl.program_id(0)          # batch-split index ("parallel" -> megacore)
    s = pl.program_id(1)          # streaming step within the split ("arbitrary")
    tr = new_lp_ref.shape[0]      # rows of the actor slab handled this step

    blk = c * spc + s             # logical row-block index (may exceed nb - 1)
    in_range = blk < nb
    row0 = blk * tr               # global row offset of this block

    # ---- per-split init of the resident output block (raw partial sums) ----
    @pl.when(s == 0)
    def _init():
        out_ref[...] = jnp.zeros(out_ref.shape, jnp.float32)

    # ---- critic (value) partial sum: O(B) work, done once on split 0 ----
    @pl.when((c == 0) & (s == 0))
    def _critic():
        nv = new_v_ref[...].astype(jnp.float32)
        ov = old_v_ref[...].astype(jnp.float32)
        rt = ret_ref[...].astype(jnp.float32)
        v_clip = ov + jnp.clip(nv - ov, -cliprange, cliprange)
        err = jnp.maximum((nv - rt) ** 2, (v_clip - rt) ** 2)      # (1, B)
        # Place the scalar sum at position [0, 0] of slot 4 (one-time XLU reduce).
        sel = ((jax.lax.broadcasted_iota(jnp.int32, (8, _LANE), 0) == 0) &
               (jax.lax.broadcasted_iota(jnp.int32, (8, _LANE), 1) == 0))
        out_ref[0, 4] += jnp.where(sel, jnp.sum(err), 0.0)

    def _fold(x):
        # (tr, 128) -> (8, 128) using only elementwise vreg adds on the hot path
        # (reshape splits whole (8, 128) tiles, so it is layout-free).
        r = x.shape[0]
        if r == 8:
            return x
        if r % 8 == 0:
            return jnp.sum(x.reshape(r // 8, 8, _LANE), axis=0)
        # Tiny / odd-row inputs only (single-block case): one-time sublane reduce.
        row_sum = jnp.sum(x, axis=0, keepdims=True)                # (1, 128)
        first = jax.lax.broadcasted_iota(jnp.int32, (8, _LANE), 0) == 0
        return jnp.where(first, row_sum, 0.0)

    def _accumulate(mask):
        new_lp = new_lp_ref[...].astype(jnp.float32)
        old_lp = old_lp_ref[...].astype(jnp.float32)
        ent = ent_ref[...].astype(jnp.float32)
        adv = adv_ref[...].astype(jnp.float32)

        d = new_lp - old_lp
        ratio = jnp.exp(d)                                         # EUP
        rt1 = adv * ratio
        rt2 = adv * jnp.clip(ratio, 1.0 - cliprange, 1.0 + cliprange)
        actor = jnp.minimum(rt1, rt2)
        kl = d * d
        clip = jnp.where(jnp.abs(ratio - 1.0) > cliprange, 1.0, 0.0)
        if mask is not None:
            # select (NOT multiplicative) masking: kills garbage / Inf / NaN.
            actor = jnp.where(mask, actor, 0.0)
            kl = jnp.where(mask, kl, 0.0)
            clip = jnp.where(mask, clip, 0.0)
            ent = jnp.where(mask, ent, 0.0)
        out_ref[0, 0] += _fold(actor)
        out_ref[0, 1] += _fold(kl)
        out_ref[0, 2] += _fold(clip)
        out_ref[0, 3] += _fold(ent)

    # Fast path: full tiles need no mask.  Only the ragged last tile pays for it.
    @pl.when(in_range & (row0 + tr <= rows))
    def _full_tile():
        _accumulate(None)

    @pl.when(in_range & (row0 + tr > rows))
    def _ragged_tile():
        ri = jax.lax.broadcasted_iota(jnp.int32, (tr, _LANE), 0)
        _accumulate((row0 + ri) < rows)


def ppo_loss(new_log_probs, old_log_probs, new_vals, old_vals, returns,
             advantages, entropies, *, vf_coef, ent_coef, cliprange,
             target_step_bytes=4 << 20, n_split=2):
    """Returns (loss, stats_dict), matching PPOLoss.forward semantics."""
    B, A = new_log_probs.shape
    n = B * A
    rows = -(-n // _LANE)                 # ceil(n / 128)
    n_pad = rows * _LANE
    itemsize = jnp.dtype(new_log_probs.dtype).itemsize

    def slab(x2d):
        # Copy-free row-major flatten -> (rows, 128) lane-dense view.
        flat = x2d.reshape(-1)
        if n_pad != n:
            # Fallback copy only when B*A is not 128-aligned.  Zero padding is
            # exactly neutral for every statistic (lp=0 -> ratio=1, adv=0, ent=0).
            flat = jnp.pad(flat, (0, n_pad - n))
        return flat.reshape(rows, _LANE)

    new_lp_s = slab(new_log_probs)
    old_lp_s = slab(old_log_probs)
    ent_s = slab(entropies)
    # One extra B*A stream instead of three transposed copies (perf review).
    adv_s = slab(jnp.broadcast_to(advantages.reshape(B, 1), (B, A)))

    new_v = new_vals.reshape(1, B)
    old_v = old_vals.reshape(1, B)
    ret = returns.reshape(1, B)

    # dtype-aware step sizing: ~target_step_bytes of actor input per grid step.
    bytes_per_row = 4 * _LANE * itemsize
    target_rows = max(8, (int(target_step_bytes) // bytes_per_row) // 8 * 8)
    tr = rows if rows <= target_rows else target_rows
    nb = -(-rows // tr)                   # number of real row-blocks
    n_split = n_split if nb >= 2 else 1   # harmless serial loop on 1-core chips
    spc = -(-nb // n_split)               # steps per split
    grid = (n_split, spc)

    kernel = functools.partial(
        _ppo_loss_kernel,
        cliprange=float(cliprange),
        rows=rows, nb=nb, spc=spc,
    )

    # All four actor slabs share the same streaming block spec; out-of-range
    # logical blocks (tail of the split) are clamped and skipped in-kernel.
    actor_spec = pl.BlockSpec(
        (tr, _LANE), lambda c, s: (jnp.minimum(c * spc + s, nb - 1), 0))
    vals_spec = pl.BlockSpec((1, B), lambda c, s: (0, 0))

    cost = pl.CostEstimate(
        flops=14 * n + 10 * B,
        transcendentals=n,
        bytes_accessed=4 * n_pad * itemsize
        + 3 * B * jnp.dtype(new_vals.dtype).itemsize
        + n_split * 5 * 8 * _LANE * 4,
    )

    partials = pl.pallas_call(
        kernel,
        out_shape=jax.ShapeDtypeStruct((n_split, 5, 8, _LANE), jnp.float32),
        grid_spec=pltpu.PrefetchScalarGridSpec(
            num_scalar_prefetch=0,
            grid=grid,
            in_specs=[actor_spec, actor_spec, actor_spec, actor_spec,
                      vals_spec, vals_spec, vals_spec],
            out_specs=pl.BlockSpec((1, 5, 8, _LANE),
                                   lambda c, s: (c, 0, 0, 0)),
        ),
        compiler_params=pltpu.CompilerParams(
            dimension_semantics=("parallel", "arbitrary")),
        cost_estimate=cost,
    )(new_lp_s, old_lp_s, ent_s, adv_s, new_v, old_v, ret)

    # Tiny scalar combine in the wrapper (per-split raw partial sums -> means).
    sums = jnp.sum(partials, axis=(0, 2, 3))          # (5,)
    inv_na = 1.0 / float(n)
    inv_nb = 1.0 / float(B)
    policy_loss = -(sums[0] * inv_na)
    approxkl = 0.5 * sums[1] * inv_na
    clipfrac = sums[2] * inv_na
    entropy = sums[3] * inv_na
    value_loss = 0.5 * sums[4] * inv_nb
    loss = policy_loss + vf_coef * value_loss - ent_coef * entropy

    stats = {
        "loss/policy_loss": policy_loss,
        "loss/value_loss": value_loss,
        "loss/policy_entropy": entropy,
        "loss/approxkl": approxkl,
        "loss/clipfrac": clipfrac,
    }
    return loss, stats


def _reference(new_lp, old_lp, new_v, old_v, ret, adv, ent, vf_coef, ent_coef, c):
    advs = adv.reshape(new_lp.shape[:-1] + (-1,))
    vals_clipped = old_v + jnp.clip(new_v - old_v, -c, c)
    cl = 0.5 * jnp.mean(jnp.maximum((new_v - ret) ** 2, (vals_clipped - ret) ** 2))
    ratio = jnp.exp(new_lp - old_lp)
    approxkl = 0.5 * jnp.mean((old_lp - new_lp) ** 2)
    clipfrac = jnp.mean((jnp.abs(ratio - 1.0) > c).astype(jnp.float32))
    al = -jnp.mean(jnp.minimum(advs * ratio, advs * jnp.clip(ratio, 1 - c, 1 + c)))
    en = jnp.mean(ent)
    loss = al + vf_coef * cl - ent_coef * en
    return loss, al, cl, en, approxkl, clipfrac


if __name__ == "__main__":
    VF_COEF, ENT_COEF = 0.5, 0.01
    CLIPRANGE = 0.2               # set via the module's CLIPRANGE property setter

    def make_inputs(key, B, A):
        ks = jax.random.split(key, 7)
        return dict(
            new_log_probs=-jnp.abs(jax.random.normal(ks[0], (B, A), jnp.float32)),
            old_log_probs=-jnp.abs(jax.random.normal(ks[1], (B, A), jnp.float32)),
            new_vals=jax.random.normal(ks[2], (B, 1), jnp.float32),
            old_vals=jax.random.normal(ks[3], (B, 1), jnp.float32),
            returns=jax.random.normal(ks[4], (B, 1), jnp.float32),
            advantages=jax.random.normal(ks[5], (B,), jnp.float32),
            entropies=jnp.abs(jax.random.normal(ks[6], (B, A), jnp.float32)),
        )

    # Small cases chosen to cover: aligned single-block, multi-block ragged stream
    # with the 2-way split (and a clamped tail step), and the odd-row fold path.
    cases = [
        (256, 4, 4 << 20),        # B*A = 1024 -> one full (8, 128) block
        (1000, 5, 32 * 1024),     # 40 rows, tr=16, nb=3, n_split=2, ragged tail
        (100, 3, 4 << 20),        # 3 rows -> tiny single block, odd-row fold
    ]

    key = jax.random.PRNGKey(0)
    for (B, A, tsb) in cases:
        key, sub = jax.random.split(key)
        inp = make_inputs(sub, B, A)
        loss, stats = ppo_loss(
            inp["new_log_probs"], inp["old_log_probs"], inp["new_vals"],
            inp["old_vals"], inp["returns"], inp["advantages"], inp["entropies"],
            vf_coef=VF_COEF, ent_coef=ENT_COEF, cliprange=CLIPRANGE,
            target_step_bytes=tsb,
        )
        loss = jax.block_until_ready(loss)
        jax.block_until_ready(stats)

        ref_loss, ref_al, ref_cl, ref_en, ref_kl, ref_cf = _reference(
            inp["new_log_probs"], inp["old_log_probs"], inp["new_vals"],
            inp["old_vals"], inp["returns"], inp["advantages"], inp["entropies"],
            VF_COEF, ENT_COEF, CLIPRANGE)

        assert jnp.allclose(loss, ref_loss, rtol=1e-5, atol=1e-5), (B, A, loss, ref_loss)
        assert jnp.allclose(stats["loss/policy_loss"], ref_al, rtol=1e-5, atol=1e-5)
        assert jnp.allclose(stats["loss/value_loss"], ref_cl, rtol=1e-5, atol=1e-5)
        assert jnp.allclose(stats["loss/policy_entropy"], ref_en, rtol=1e-5, atol=1e-5)
        assert jnp.allclose(stats["loss/approxkl"], ref_kl, rtol=1e-5, atol=1e-5)
        assert jnp.allclose(stats["loss/clipfrac"], ref_cf, rtol=1e-5, atol=1e-5)

    print("KERNEL_OK")
</pallas_src>

<mosaic_0001>
module attributes {stable_mosaic.version = 11 : i64} {
  func.func @_ppo_loss_kernel(%arg0: i32, %arg1: i32, %arg2: memref<8x128xf32, #tpu.memory_space<vmem>>, %arg3: memref<8x128xf32, #tpu.memory_space<vmem>>, %arg4: memref<8x128xf32, #tpu.memory_space<vmem>>, %arg5: memref<8x128xf32, #tpu.memory_space<vmem>>, %arg6: memref<1x256xf32, #tpu.memory_space<vmem>>, %arg7: memref<1x256xf32, #tpu.memory_space<vmem>>, %arg8: memref<1x256xf32, #tpu.memory_space<vmem>>, %arg9: memref<1x5x8x128xf32, #tpu.memory_space<vmem>>) attributes {dimension_semantics = [#tpu.dimension_semantics<parallel>, #tpu.dimension_semantics<arbitrary>], iteration_bounds = array<i64: 1, 1>, scalar_prefetch = 0 : i64, scratch_operands = 0 : i64, tpu.core_type = #tpu.core_type<tc>, window_params = [{transform_indices = @transform_0, window_bounds = array<i64: 8, 128>}, {transform_indices = @transform_1, window_bounds = array<i64: 8, 128>}, {transform_indices = @transform_2, window_bounds = array<i64: 8, 128>}, {transform_indices = @transform_3, window_bounds = array<i64: 8, 128>}, {pipeline_mode = #tpu.pipeline_mode<synchronous>, transform_indices = @transform_4, window_bounds = array<i64: 1, 256>}, {pipeline_mode = #tpu.pipeline_mode<synchronous>, transform_indices = @transform_5, window_bounds = array<i64: 1, 256>}, {pipeline_mode = #tpu.pipeline_mode<synchronous>, transform_indices = @transform_6, window_bounds = array<i64: 1, 256>}, {transform_indices = @transform_7, window_bounds = array<i64: 1, 5, 8, 128>}]} {
    %c1_i32 = arith.constant 1 : i32
    %0 = arith.muli %arg0, %c1_i32 : i32
    %1 = arith.addi %0, %arg1 : i32
    %c1_i32_0 = arith.constant 1 : i32
    %2 = arith.cmpi slt, %1, %c1_i32_0 : i32
    %c8_i32 = arith.constant 8 : i32
    %3 = arith.muli %1, %c8_i32 : i32
    %c0_i32 = arith.constant 0 : i32
    %4 = arith.cmpi eq, %arg1, %c0_i32 : i32
    %5 = arith.extui %4 : i1 to i32
    %c0_i32_1 = arith.constant 0 : i32
    %6 = arith.cmpi ne, %5, %c0_i32_1 : i32
    scf.if %6 {
      %cst = arith.constant 0.000000e+00 : f32
      %22 = vector.broadcast %cst : f32 to vector<1x5x8x128xf32>
      %c0 = arith.constant 0 : index
      %c0_11 = arith.constant 0 : index
      %c0_12 = arith.constant 0 : index
      %c0_13 = arith.constant 0 : index
      %23 = vector.load %arg9[%c0, %c0_11, %c0_12, %c0_13] : memref<1x5x8x128xf32, #tpu.memory_space<vmem>>, vector<1x5x8x128xf32>
      tpu.vector_store %arg9[%c0, %c0_11, %c0_12, %c0_13], %22 {strides = array<i32>} : memref<1x5x8x128xf32, #tpu.memory_space<vmem>>, vector<1x5x8x128xf32>,
    } else {
    }
    %c0_i32_2 = arith.constant 0 : i32
    %7 = arith.cmpi eq, %arg0, %c0_i32_2 : i32
    %c0_i32_3 = arith.constant 0 : i32
    %8 = arith.cmpi eq, %arg1, %c0_i32_3 : i32
    %9 = arith.andi %7, %8 : i1
    %10 = arith.extui %9 : i1 to i32
    %c0_i32_4 = arith.constant 0 : i32
    %11 = arith.cmpi ne, %10, %c0_i32_4 : i32
    scf.if %11 {
      %c0 = arith.constant 0 : index
      %c0_11 = arith.constant 0 : index
      %22 = vector.load %arg6[%c0, %c0_11] : memref<1x256xf32, #tpu.memory_space<vmem>>, vector<1x256xf32>
      %c0_12 = arith.constant 0 : index
      %c0_13 = arith.constant 0 : index
      %23 = vector.load %arg7[%c0_12, %c0_13] : memref<1x256xf32, #tpu.memory_space<vmem>>, vector<1x256xf32>
      %c0_14 = arith.constant 0 : index
      %c0_15 = arith.constant 0 : index
      %24 = vector.load %arg8[%c0_14, %c0_15] : memref<1x256xf32, #tpu.memory_space<vmem>>, vector<1x256xf32>
      %25 = arith.subf %22, %23 : vector<1x256xf32>
      %cst = arith.constant -2.000000e-01 : f32
      %cst_16 = arith.constant 2.000000e-01 : f32
      %26 = vector.broadcast %cst : f32 to vector<1x256xf32>
      %27 = arith.maximumf %26, %25 : vector<1x256xf32>
      %28 = vector.broadcast %cst_16 : f32 to vector<1x256xf32>
      %29 = arith.minimumf %28, %27 : vector<1x256xf32>
      %30 = arith.addf %23, %29 : vector<1x256xf32>
      %31 = arith.subf %22, %24 : vector<1x256xf32>
      %32 = arith.mulf %31, %31 : vector<1x256xf32>
      %33 = arith.subf %30, %24 : vector<1x256xf32>
      %34 = arith.mulf %33, %33 : vector<1x256xf32>
      %35 = arith.maximumf %32, %34 : vector<1x256xf32>
      %36 = tpu.iota {dimensions = array<i32: 0>} : vector<8x128xi32>
      %c0_i32_17 = arith.constant 0 : i32
      %37 = vector.broadcast %c0_i32_17 : i32 to vector<8x128xi32>
      %38 = arith.cmpi eq, %36, %37 : vector<8x128xi32>
      %39 = tpu.iota {dimensions = array<i32: 1>} : vector<8x128xi32>
      %c0_i32_18 = arith.constant 0 : i32
      %40 = vector.broadcast %c0_i32_18 : i32 to vector<8x128xi32>
      %41 = arith.cmpi eq, %39, %40 : vector<8x128xi32>
      %42 = arith.andi %38, %41 : vector<8x128xi1>
      %c0_19 = arith.constant 0 : index
      %c4 = arith.constant 4 : index
      %c0_20 = arith.constant 0 : index
      %c0_21 = arith.constant 0 : index
      %43 = vector.load %arg9[%c0_19, %c4, %c0_20, %c0_21] : memref<1x5x8x128xf32, #tpu.memory_space<vmem>>, vector<1x1x8x128xf32>
      %44 = vector.shape_cast %43 : vector<1x1x8x128xf32> to vector<8x128xf32>
      %45 = vector.shape_cast %35 : vector<1x256xf32> to vector<1x1x256xf32>
      %cst_22 = arith.constant dense<0.000000e+00> : vector<1xf32>
      %46 = vector.multi_reduction <add>, %45, %cst_22 [1, 2] : vector<1x1x256xf32> to vector<1xf32>
      %47 = vector.shape_cast %46 : vector<1xf32> to vector<1x1x1xf32>
      %48 = vector.extract %47[0, 0, 0] : f32 from vector<1x1x1xf32>
      %cst_23 = arith.constant 0.000000e+00 : f32
      %49 = vector.broadcast %48 : f32 to vector<8x128xf32>
      %50 = vector.broadcast %cst_23 : f32 to vector<8x128xf32>
      %51 = arith.select %42, %49, %50 : vector<8x128xi1>, vector<8x128xf32>
      %52 = arith.addf %44, %51 : vector<8x128xf32>
      %c0_24 = arith.constant 0 : index
      %c4_25 = arith.constant 4 : index
      %c0_26 = arith.constant 0 : index
      %c0_27 = arith.constant 0 : index
      %53 = vector.load %arg9[%c0_24, %c4_25, %c0_26, %c0_27] : memref<1x5x8x128xf32, #tpu.memory_space<vmem>>, vector<1x1x8x128xf32>
      %54 = vector.shape_cast %53 : vector<1x1x8x128xf32> to vector<8x128xf32>
      %55 = vector.shape_cast %52 : vector<8x128xf32> to vector<1x1x8x128xf32>
      tpu.vector_store %arg9[%c0_24, %c4_25, %c0_26, %c0_27], %55 {strides = array<i32>} : memref<1x5x8x128xf32, #tpu.memory_space<vmem>>, vector<1x1x8x128xf32>,
    } else {
    }
    %c8_i32_5 = arith.constant 8 : i32
    %12 = arith.addi %3, %c8_i32_5 : i32
    %c8_i32_6 = arith.constant 8 : i32
    %13 = arith.cmpi sle, %12, %c8_i32_6 : i32
    %14 = arith.andi %2, %13 : i1
    %15 = arith.extui %14 : i1 to i32
    %c0_i32_7 = arith.constant 0 : i32
    %16 = arith.cmpi ne, %15, %c0_i32_7 : i32
    scf.if %16 {
      %c0 = arith.constant 0 : index
      %c0_11 = arith.constant 0 : index
      %22 = vector.load %arg2[%c0, %c0_11] : memref<8x128xf32, #tpu.memory_space<vmem>>, vector<8x128xf32>
      %c0_12 = arith.constant 0 : index
      %c0_13 = arith.constant 0 : index
      %23 = vector.load %arg3[%c0_12, %c0_13] : memref<8x128xf32, #tpu.memory_space<vmem>>, vector<8x128xf32>
      %c0_14 = arith.constant 0 : index
      %c0_15 = arith.constant 0 : index
      %24 = vector.load %arg4[%c0_14, %c0_15] : memref<8x128xf32, #tpu.memory_space<vmem>>, vector<8x128xf32>
      %c0_16 = arith.constant 0 : index
      %c0_17 = arith.constant 0 : index
      %25 = vector.load %arg5[%c0_16, %c0_17] : memref<8x128xf32, #tpu.memory_space<vmem>>, vector<8x128xf32>
      %26 = arith.subf %22, %23 : vector<8x128xf32>
      %27 = math.exp %26 : vector<8x128xf32>
      %28 = arith.mulf %25, %27 : vector<8x128xf32>
      %cst = arith.constant 8.000000e-01 : f32
      %cst_18 = arith.constant 1.200000e+00 : f32
      %29 = vector.broadcast %cst : f32 to vector<8x128xf32>
      %30 = arith.maximumf %29, %27 : vector<8x128xf32>
      %31 = vector.broadcast %cst_18 : f32 to vector<8x128xf32>
      %32 = arith.minimumf %31, %30 : vector<8x128xf32>
      %33 = arith.mulf %25, %32 : vector<8x128xf32>
      %34 = arith.minimumf %28, %33 : vector<8x128xf32>
      %35 = arith.mulf %26, %26 : vector<8x128xf32>
      %cst_19 = arith.constant 1.000000e+00 : f32
      %36 = vector.broadcast %cst_19 : f32 to vector<8x128xf32>
      %37 = arith.subf %27, %36 : vector<8x128xf32>
      %38 = math.absf %37 : vector<8x128xf32>
      %cst_20 = arith.constant 2.000000e-01 : f32
      %39 = vector.broadcast %cst_20 : f32 to vector<8x128xf32>
      %40 = arith.cmpf ogt, %38, %39 : vector<8x128xf32>
      %cst_21 = arith.constant 1.000000e+00 : f32
      %cst_22 = arith.constant 0.000000e+00 : f32
      %41 = vector.broadcast %cst_21 : f32 to vector<8x128xf32>
      %42 = vector.broadcast %cst_22 : f32 to vector<8x128xf32>
      %43 = arith.select %40, %41, %42 : vector<8x128xi1>, vector<8x128xf32>
      %c0_23 = arith.constant 0 : index
      %c0_24 = arith.constant 0 : index
      %c0_25 = arith.constant 0 : index
      %c0_26 = arith.constant 0 : index
      %44 = vector.load %arg9[%c0_23, %c0_24, %c0_25, %c0_26] : memref<1x5x8x128xf32, #tpu.memory_space<vmem>>, vector<1x1x8x128xf32>
      %45 = vector.shape_cast %44 : vector<1x1x8x128xf32> to vector<8x128xf32>
      %46 = arith.addf %45, %34 : vector<8x128xf32>
      %c0_27 = arith.constant 0 : index
      %c0_28 = arith.constant 0 : index
      %c0_29 = arith.constant 0 : index
      %c0_30 = arith.constant 0 : index
      %47 = vector.load %arg9[%c0_27, %c0_28, %c0_29, %c0_30] : memref<1x5x8x128xf32, #tpu.memory_space<vmem>>, vector<1x1x8x128xf32>
      %48 = vector.shape_cast %47 : vector<1x1x8x128xf32> to vector<8x128xf32>
      %49 = vector.shape_cast %46 : vector<8x128xf32> to vector<1x1x8x128xf32>
      tpu.vector_store %arg9[%c0_27, %c0_28, %c0_29, %c0_30], %49 {strides = array<i32>} : memref<1x5x8x128xf32, #tpu.memory_space<vmem>>, vector<1x1x8x128xf32>,
      %c0_31 = arith.constant 0 : index
      %c1 = arith.constant 1 : index
      %c0_32 = arith.constant 0 : index
      %c0_33 = arith.constant 0 : index
      %50 = vector.load %arg9[%c0_31, %c1, %c0_32, %c0_33] : memref<1x5x8x128xf32, #tpu.memory_space<vmem>>, vector<1x1x8x128xf32>
      %51 = vector.shape_cast %50 : vector<1x1x8x128xf32> to vector<8x128xf32>
      %52 = arith.addf %51, %35 : vector<8x128xf32>
      %c0_34 = arith.constant 0 : index
      %c1_35 = arith.constant 1 : index
      %c0_36 = arith.constant 0 : index
      %c0_37 = arith.constant 0 : index
      %53 = vector.load %arg9[%c0_34, %c1_35, %c0_36, %c0_37] : memref<1x5x8x128xf32, #tpu.memory_space<vmem>>, vector<1x1x8x128xf32>
      %54 = vector.shape_cast %53 : vector<1x1x8x128xf32> to vector<8x128xf32>
      %55 = vector.shape_cast %52 : vector<8x128xf32> to vector<1x1x8x128xf32>
      tpu.vector_store %arg9[%c0_34, %c1_35, %c0_36, %c0_37], %55 {strides = array<i32>} : memref<1x5x8x128xf32, #tpu.memory_space<vmem>>, vector<1x1x8x128xf32>,
      %c0_38 = arith.constant 0 : index
      %c2 = arith.constant 2 : index
      %c0_39 = arith.constant 0 : index
      %c0_40 = arith.constant 0 : index
      %56 = vector.load %arg9[%c0_38, %c2, %c0_39, %c0_40] : memref<1x5x8x128xf32, #tpu.memory_space<vmem>>, vector<1x1x8x128xf32>
      %57 = vector.shape_cast %56 : vector<1x1x8x128xf32> to vector<8x128xf32>
      %58 = arith.addf %57, %43 : vector<8x128xf32>
      %c0_41 = arith.constant 0 : index
      %c2_42 = arith.constant 2 : index
      %c0_43 = arith.constant 0 : index
      %c0_44 = arith.constant 0 : index
      %59 = vector.load %arg9[%c0_41, %c2_42, %c0_43, %c0_44] : memref<1x5x8x128xf32, #tpu.memory_space<vmem>>, vector<1x1x8x128xf32>
      %60 = vector.shape_cast %59 : vector<1x1x8x128xf32> to vector<8x128xf32>
      %61 = vector.shape_cast %58 : vector<8x128xf32> to vector<1x1x8x128xf32>
      tpu.vector_store %arg9[%c0_41, %c2_42, %c0_43, %c0_44], %61 {strides = array<i32>} : memref<1x5x8x128xf32, #tpu.memory_space<vmem>>, vector<1x1x8x128xf32>,
      %c0_45 = arith.constant 0 : index
      %c3 = arith.constant 3 : index
      %c0_46 = arith.constant 0 : index
      %c0_47 = arith.constant 0 : index
      %62 = vector.load %arg9[%c0_45, %c3, %c0_46, %c0_47] : memref<1x5x8x128xf32, #tpu.memory_space<vmem>>, vector<1x1x8x128xf32>
      %63 = vector.shape_cast %62 : vector<1x1x8x128xf32> to vector<8x128xf32>
      %64 = arith.addf %63, %24 : vector<8x128xf32>
      %c0_48 = arith.constant 0 : index
      %c3_49 = arith.constant 3 : index
      %c0_50 = arith.constant 0 : index
      %c0_51 = arith.constant 0 : index
      %65 = vector.load %arg9[%c0_48, %c3_49, %c0_50, %c0_51] : memref<1x5x8x128xf32, #tpu.memory_space<vmem>>, vector<1x1x8x128xf32>
      %66 = vector.shape_cast %65 : vector<1x1x8x128xf32> to vector<8x128xf32>
      %67 = vector.shape_cast %64 : vector<8x128xf32> to vector<1x1x8x128xf32>
      tpu.vector_store %arg9[%c0_48, %c3_49, %c0_50, %c0_51], %67 {strides = array<i32>} : memref<1x5x8x128xf32, #tpu.memory_space<vmem>>, vector<1x1x8x128xf32>,
    } else {
    }
    %c8_i32_8 = arith.constant 8 : i32
    %17 = arith.addi %3, %c8_i32_8 : i32
    %c8_i32_9 = arith.constant 8 : i32
    %18 = arith.cmpi sgt, %17, %c8_i32_9 : i32
    %19 = arith.andi %2, %18 : i1
    %20 = arith.extui %19 : i1 to i32
    %c0_i32_10 = arith.constant 0 : i32
    %21 = arith.cmpi ne, %20, %c0_i32_10 : i32
    scf.if %21 {
      %22 = tpu.iota {dimensions = array<i32: 0>} : vector<8x128xi32>
      %23 = vector.broadcast %3 : i32 to vector<8x128xi32>
      %24 = arith.addi %23, %22 : vector<8x128xi32>
      %c8_i32_11 = arith.constant 8 : i32
      %25 = vector.broadcast %c8_i32_11 : i32 to vector<8x128xi32>
      %26 = arith.cmpi slt, %24, %25 : vector<8x128xi32>
      %c0 = arith.constant 0 : index
      %c0_12 = arith.constant 0 : index
      %27 = vector.load %arg2[%c0, %c0_12] : memref<8x128xf32, #tpu.memory_space<vmem>>, vector<8x128xf32>
      %c0_13 = arith.constant 0 : index
      %c0_14 = arith.constant 0 : index
      %28 = vector.load %arg3[%c0_13, %c0_14] : memref<8x128xf32, #tpu.memory_space<vmem>>, vector<8x128xf32>
      %c0_15 = arith.constant 0 : index
      %c0_16 = arith.constant 0 : index
      %29 = vector.load %arg4[%c0_15, %c0_16] : memref<8x128xf32, #tpu.memory_space<vmem>>, vector<8x128xf32>
      %c0_17 = arith.constant 0 : index
      %c0_18 = arith.constant 0 : index
      %30 = vector.load %arg5[%c0_17, %c0_18] : memref<8x128xf32, #tpu.memory_space<vmem>>, vector<8x128xf32>
      %31 = arith.subf %27, %28 : vector<8x128xf32>
      %32 = math.exp %31 : vector<8x128xf32>
      %33 = arith.mulf %30, %32 : vector<8x128xf32>
      %cst = arith.constant 8.000000e-01 : f32
      %cst_19 = arith.constant 1.200000e+00 : f32
      %34 = vector.broadcast %cst : f32 to vector<8x128xf32>
      %35 = arith.maximumf %34, %32 : vector<8x128xf32>
      %36 = vector.broadcast %cst_19 : f32 to vector<8x128xf32>
      %37 = arith.minimumf %36, %35 : vector<8x128xf32>
      %38 = arith.mulf %30, %37 : vector<8x128xf32>
      %39 = arith.minimumf %33, %38 : vector<8x128xf32>
      %40 = arith.mulf %31, %31 : vector<8x128xf32>
      %cst_20 = arith.constant 1.000000e+00 : f32
      %41 = vector.broadcast %cst_20 : f32 to vector<8x128xf32>
      %42 = arith.subf %32, %41 : vector<8x128xf32>
      %43 = math.absf %42 : vector<8x128xf32>
      %cst_21 = arith.constant 2.000000e-01 : f32
      %44 = vector.broadcast %cst_21 : f32 to vector<8x128xf32>
      %45 = arith.cmpf ogt, %43, %44 : vector<8x128xf32>
      %cst_22 = arith.constant 1.000000e+00 : f32
      %cst_23 = arith.constant 0.000000e+00 : f32
      %46 = vector.broadcast %cst_22 : f32 to vector<8x128xf32>
      %47 = vector.broadcast %cst_23 : f32 to vector<8x128xf32>
      %48 = arith.select %45, %46, %47 : vector<8x128xi1>, vector<8x128xf32>
      %cst_24 = arith.constant 0.000000e+00 : f32
      %49 = vector.broadcast %cst_24 : f32 to vector<8x128xf32>
      %50 = arith.select %26, %39, %49 : vector<8x128xi1>, vector<8x128xf32>
      %cst_25 = arith.constant 0.000000e+00 : f32
      %51 = vector.broadcast %cst_25 : f32 to vector<8x128xf32>
      %52 = arith.select %26, %40, %51 : vector<8x128xi1>, vector<8x128xf32>
      %cst_26 = arith.constant 0.000000e+00 : f32
      %53 = vector.broadcast %cst_26 : f32 to vector<8x128xf32>
      %54 = arith.select %26, %48, %53 : vector<8x128xi1>, vector<8x128xf32>
      %cst_27 = arith.constant 0.000000e+00 : f32
      %55 = vector.broadcast %cst_27 : f32 to vector<8x128xf32>
      %56 = arith.select %26, %29, %55 : vector<8x128xi1>, vector<8x128xf32>
      %c0_28 = arith.constant 0 : index
      %c0_29 = arith.constant 0 : index
      %c0_30 = arith.constant 0 : index
      %c0_31 = arith.constant 0 : index
      %57 = vector.load %arg9[%c0_28, %c0_29, %c0_30, %c0_31] : memref<1x5x8x128xf32, #tpu.memory_space<vmem>>, vector<1x1x8x128xf32>
      %58 = vector.shape_cast %57 : vector<1x1x8x128xf32> to vector<8x128xf32>
      %59 = arith.addf %58, %50 : vector<8x128xf32>
      %c0_32 = arith.constant 0 : index
      %c0_33 = arith.constant 0 : index
      %c0_34 = arith.constant 0 : index
      %c0_35 = arith.constant 0 : index
      %60 = vector.load %arg9[%c0_32, %c0_33, %c0_34, %c0_35] : memref<1x5x8x128xf32, #tpu.memory_space<vmem>>, vector<1x1x8x128xf32>
      %61 = vector.shape_cast %60 : vector<1x1x8x128xf32> to vector<8x128xf32>
      %62 = vector.shape_cast %59 : vector<8x128xf32> to vector<1x1x8x128xf32>
      tpu.vector_store %arg9[%c0_32, %c0_33, %c0_34, %c0_35], %62 {strides = array<i32>} : memref<1x5x8x128xf32, #tpu.memory_space<vmem>>, vector<1x1x8x128xf32>,
      %c0_36 = arith.constant 0 : index
      %c1 = arith.constant 1 : index
      %c0_37 = arith.constant 0 : index
      %c0_38 = arith.constant 0 : index
      %63 = vector.load %arg9[%c0_36, %c1, %c0_37, %c0_38] : memref<1x5x8x128xf32, #tpu.memory_space<vmem>>, vector<1x1x8x128xf32>
      %64 = vector.shape_cast %63 : vector<1x1x8x128xf32> to vector<8x128xf32>
      %65 = arith.addf %64, %52 : vector<8x128xf32>
      %c0_39 = arith.constant 0 : index
      %c1_40 = arith.constant 1 : index
      %c0_41 = arith.constant 0 : index
      %c0_42 = arith.constant 0 : index
      %66 = vector.load %arg9[%c0_39, %c1_40, %c0_41, %c0_42] : memref<1x5x8x128xf32, #tpu.memory_space<vmem>>, vector<1x1x8x128xf32>
      %67 = vector.shape_cast %66 : vector<1x1x8x128xf32> to vector<8x128xf32>
      %68 = vector.shape_cast %65 : vector<8x128xf32> to vector<1x1x8x128xf32>
      tpu.vector_store %arg9[%c0_39, %c1_40, %c0_41, %c0_42], %68 {strides = array<i32>} : memref<1x5x8x128xf32, #tpu.memory_space<vmem>>, vector<1x1x8x128xf32>,
      %c0_43 = arith.constant 0 : index
      %c2 = arith.constant 2 : index
      %c0_44 = arith.constant 0 : index
      %c0_45 = arith.constant 0 : index
      %69 = vector.load %arg9[%c0_43, %c2, %c0_44, %c0_45] : memref<1x5x8x128xf32, #tpu.memory_space<vmem>>, vector<1x1x8x128xf32>
      %70 = vector.shape_cast %69 : vector<1x1x8x128xf32> to vector<8x128xf32>
      %71 = arith.addf %70, %54 : vector<8x128xf32>
      %c0_46 = arith.constant 0 : index
      %c2_47 = arith.constant 2 : index
      %c0_48 = arith.constant 0 : index
      %c0_49 = arith.constant 0 : index
      %72 = vector.load %arg9[%c0_46, %c2_47, %c0_48, %c0_49] : memref<1x5x8x128xf32, #tpu.memory_space<vmem>>, vector<1x1x8x128xf32>
      %73 = vector.shape_cast %72 : vector<1x1x8x128xf32> to vector<8x128xf32>
      %74 = vector.shape_cast %71 : vector<8x128xf32> to vector<1x1x8x128xf32>
      tpu.vector_store %arg9[%c0_46, %c2_47, %c0_48, %c0_49], %74 {strides = array<i32>} : memref<1x5x8x128xf32, #tpu.memory_space<vmem>>, vector<1x1x8x128xf32>,
      %c0_50 = arith.constant 0 : index
      %c3 = arith.constant 3 : index
      %c0_51 = arith.constant 0 : index
      %c0_52 = arith.constant 0 : index
      %75 = vector.load %arg9[%c0_50, %c3, %c0_51, %c0_52] : memref<1x5x8x128xf32, #tpu.memory_space<vmem>>, vector<1x1x8x128xf32>
      %76 = vector.shape_cast %75 : vector<1x1x8x128xf32> to vector<8x128xf32>
      %77 = arith.addf %76, %56 : vector<8x128xf32>
      %c0_53 = arith.constant 0 : index
      %c3_54 = arith.constant 3 : index
      %c0_55 = arith.constant 0 : index
      %c0_56 = arith.constant 0 : index
      %78 = vector.load %arg9[%c0_53, %c3_54, %c0_55, %c0_56] : memref<1x5x8x128xf32, #tpu.memory_space<vmem>>, vector<1x1x8x128xf32>
      %79 = vector.shape_cast %78 : vector<1x1x8x128xf32> to vector<8x128xf32>
      %80 = vector.shape_cast %77 : vector<8x128xf32> to vector<1x1x8x128xf32>
      tpu.vector_store %arg9[%c0_53, %c3_54, %c0_55, %c0_56], %80 {strides = array<i32>} : memref<1x5x8x128xf32, #tpu.memory_space<vmem>>, vector<1x1x8x128xf32>,
    } else {
    }
    return
  }
  func.func @transform_0(%arg0: i32, %arg1: i32) -> (i32, i32) {
    %c1_i32 = arith.constant 1 : i32
    %0 = arith.muli %arg0, %c1_i32 : i32
    %1 = arith.addi %0, %arg1 : i32
    %c0_i32 = arith.constant 0 : i32
    %2 = arith.minsi %1, %c0_i32 : i32
    %c0_i32_0 = arith.constant 0 : i32
    %c0_i32_1 = arith.constant 0 : i32
    return %2, %c0_i32_0 : i32, i32
  }
  func.func @transform_1(%arg0: i32, %arg1: i32) -> (i32, i32) {
    %c1_i32 = arith.constant 1 : i32
    %0 = arith.muli %arg0, %c1_i32 : i32
    %1 = arith.addi %0, %arg1 : i32
    %c0_i32 = arith.constant 0 : i32
    %2 = arith.minsi %1, %c0_i32 : i32
    %c0_i32_0 = arith.constant 0 : i32
    %c0_i32_1 = arith.constant 0 : i32
    return %2, %c0_i32_0 : i32, i32
  }
  func.func @transform_2(%arg0: i32, %arg1: i32) -> (i32, i32) {
    %c1_i32 = arith.constant 1 : i32
    %0 = arith.muli %arg0, %c1_i32 : i32
    %1 = arith.addi %0, %arg1 : i32
    %c0_i32 = arith.constant 0 : i32
    %2 = arith.minsi %1, %c0_i32 : i32
    %c0_i32_0 = arith.constant 0 : i32
    %c0_i32_1 = arith.constant 0 : i32
    return %2, %c0_i32_0 : i32, i32
  }
  func.func @transform_3(%arg0: i32, %arg1: i32) -> (i32, i32) {
    %c1_i32 = arith.constant 1 : i32
    %0 = arith.muli %arg0, %c1_i32 : i32
    %1 = arith.addi %0, %arg1 : i32
    %c0_i32 = arith.constant 0 : i32
    %2 = arith.minsi %1, %c0_i32 : i32
    %c0_i32_0 = arith.constant 0 : i32
    %c0_i32_1 = arith.constant 0 : i32
    return %2, %c0_i32_0 : i32, i32
  }
  func.func @transform_4(%arg0: i32, %arg1: i32) -> (i32, i32) {
    %c0_i32 = arith.constant 0 : i32
    %c0_i32_0 = arith.constant 0 : i32
    %c0_i32_1 = arith.constant 0 : i32
    return %c0_i32, %c0_i32_0 : i32, i32
  }
  func.func @transform_5(%arg0: i32, %arg1: i32) -> (i32, i32) {
    %c0_i32 = arith.constant 0 : i32
    %c0_i32_0 = arith.constant 0 : i32
    %c0_i32_1 = arith.constant 0 : i32
    return %c0_i32, %c0_i32_0 : i32, i32
  }
  func.func @transform_6(%arg0: i32, %arg1: i32) -> (i32, i32) {
    %c0_i32 = arith.constant 0 : i32
    %c0_i32_0 = arith.constant 0 : i32
    %c0_i32_1 = arith.constant 0 : i32
    return %c0_i32, %c0_i32_0 : i32, i32
  }
  func.func @transform_7(%arg0: i32, %arg1: i32) -> (i32, i32, i32, i32) {
    %c0_i32 = arith.constant 0 : i32
    %c0_i32_0 = arith.constant 0 : i32
    %c0_i32_1 = arith.constant 0 : i32
    %c0_i32_2 = arith.constant 0 : i32
    return %arg0, %c0_i32, %c0_i32_0, %c0_i32_1 : i32, i32, i32, i32
  }
}

</mosaic_0001>

<bundles_post_ra>
// kernel: tpu_custom_call.1
= control target key start
LH: loop header
LB: loop body
LE: loop exit
PB: predicated region body
PF: predicated region fallthrough
CT: control target
= control target key end

     0   :  { %12 = vsyncpa [#allocation3], 0  ;;  %s514_s0 = inlined_call_operand.hbm [shape: f32[8,128], index: 0, kind: input, shape index: {}]   ;;  %s515_s1 = inlined_call_operand.hbm [shape: f32[8,128], index: 1, kind: input, shape index: {}]   ;;  %s516_s2 = inlined_call_operand.hbm [shape: f32[8,128], index: 2, kind: input, shape index: {}]   ;;  %s517_s3 = inlined_call_operand.vmem [shape: f32[8,128], index: 3, kind: input, shape index: {}]   ;;  %s518_s4 = inlined_call_operand.vmem [shape: f32[1,256], index: 4, kind: input, shape index: {}]   ;;  %s519_s5 = inlined_call_operand.vmem [shape: f32[1,256], index: 5, kind: input, shape index: {}]   ;;  %s520_s6 = inlined_call_operand.vmem [shape: f32[1,256], index: 6, kind: input, shape index: {}]   ;;  %s521_s7 = inlined_call_operand.hbm [shape: f32[1,5,8,128], index: 7, kind: output, shape index: {}]  }
   0x1   :  { %13 = vsyncpa [#allocation6], 0 }
   0x2   :  { %14 = vsyncpa [#allocation4], 0  ;;  %s401_s24 = smov [#allocation5]   ;;  %s402_s26 = smov [#allocation2]  }
   0x3   :  { %s41_s25 = sshll.u32 %s401_s24, 4  ;;  %s26_s27 = sshll.u32 %s402_s26, 4  ;;  %s42_s25 = int_to_ptr.vmem [resolvable:$true] %s41_s25  ;;  %s27_s27 = int_to_ptr.vmem [resolvable:$true] %s26_s27 }
   0x4   :  { %s307_s30 = scalar_lea.hbm %s515_s1, 128 }
   0x5   :  { %p308_p0 = scmp.ne.s32.totalorder %s515_s1, %s307_s30  ;;  %p311_p1 = scmp.lt.u32.totalorder %s307_s30, %s515_s1 }
   0x7   :  { %p313_p2 = pnand %p311_p1, %p308_p0 }
   0x9   :  { %316 = shalt.err (!%p313_p2)
}
   0xa   :  { %s317_s12 = scalar_lea.vmem %s42_s25, 128  ;;  %p322_p4 = scmp.lt.s32.totalorder %s42_s25, %s42_s25 }
   0xb   :  { %p318_p3 = scmp.ne.s32.totalorder %s42_s25, %s317_s12  ;;  %p323_p5 = scmp.lt.s32.totalorder %s317_s12, %s317_s12 }
   0xd   :  { %p324_p6 = por %p323_p5, %p322_p4 }
   0xf   :  { %p325_p7 = pnand %p324_p6, %p318_p3 }
  0x11   :  { %328 = shalt.err (!%p325_p7)
}
  0x12   :  { %44 = dma.hbm_to_vmem [thread:$0]  %s515_s1, 128, %s42_s25, [#allocation6]  }
  0x13   :  { %s329_s17 = scalar_lea.hbm %s514_s0, 128 }
  0x14   :  { %p330_p8 = scmp.ne.s32.totalorder %s514_s0, %s329_s17  ;;  %p333_p9 = scmp.lt.u32.totalorder %s329_s17, %s514_s0 }
  0x16   :  { %p335_p10 = pnand %p333_p9, %p330_p8 }
  0x18   :  { %338 = shalt.err (!%p335_p10)
}
  0x19   :  { %s339_s22 = scalar_lea.vmem %s27_s27, 128  ;;  %p344_p12 = scmp.lt.s32.totalorder %s27_s27, %s27_s27 }
  0x1a   :  { %p340_p11 = scmp.ne.s32.totalorder %s27_s27, %s339_s22  ;;  %p345_p13 = scmp.lt.s32.totalorder %s339_s22, %s339_s22 }
  0x1c   :  { %p346_p0 = por %p345_p13, %p344_p12 }
  0x1e   :  { %p347_p1 = pnand %p346_p0, %p340_p11 }
  0x20   :  { %350 = shalt.err (!%p347_p1)
}
  0x21   :  { %29 = dma.hbm_to_vmem [thread:$0]  %s514_s0, 128, %s27_s27, [#allocation3]  }
  0x22   :  { %s403_s24 = smov [#allocation7]   ;;  %s351_s29 = scalar_lea.hbm %s516_s2, 128 }
  0x23   :  { %s56_s25 = sshll.u32 %s403_s24, 4  ;;  %p352_p2 = scmp.ne.s32.totalorder %s516_s2, %s351_s29  ;;  %s57_s25 = int_to_ptr.vmem [resolvable:$true] %s56_s25 }
  0x24   :  { %p355_p3 = scmp.lt.u32.totalorder %s351_s29, %s516_s2 }
  0x26   :  { %p357_p4 = pnand %p355_p3, %p352_p2 }
  0x28   :  { %360 = shalt.err (!%p357_p4)
}
  0x29   :  { %s361_s11 = scalar_lea.vmem %s57_s25, 128  ;;  %p366_p6 = scmp.lt.s32.totalorder %s57_s25, %s57_s25 }
  0x2a   :  { %p362_p5 = scmp.ne.s32.totalorder %s57_s25, %s361_s11  ;;  %p367_p7 = scmp.lt.s32.totalorder %s361_s11, %s361_s11 }
  0x2c   :  { %p368_p8 = por %p367_p7, %p366_p6 }
  0x2e   :  { %p369_p9 = pnand %p368_p8, %p362_p5 }
  0x30   :  { %372 = shalt.err (!%p369_p9)
}
  0x31   :  { %59 = dma.hbm_to_vmem [thread:$0]  %s516_s2, 128, %s57_s25, [#allocation6]  }
  0x32   :  { %395 = dma.done.wait [#allocation3], 128  }
  0x33   :  { %396 = vsyncadd [#allocation3], 4294967168 }
  0x34   :  { %397 = dma.done.wait [#allocation6], 256  }
  0x35   :  { %398 = vsyncadd [#allocation6], 4294967040  ;;  %v130_v0 = vld [vmem:[%s518_s4] sm:$0x3]  ;;  %v142_v4 = vlaneseq  ;;  %vm162_vm0 = vcmask 1040384   ;;  %v186_v23 = vld [vmem:[#allocation5] sm:$0xff] }
  0x36   :  { %v131_v1 = vld [vmem:[%s519_s5] sm:$0x3]  ;;  %v187_v36 = vld [vmem:[#allocation7] sm:$0xff]  ;;  %v404_v37 = vmov 0.0  }
  0x37   :  { %v132_v2 = vld [vmem:[%s520_s6] sm:$0x3]  ;;  %v133_v3 = vsub.f32 %v130_v0, %v131_v1  ;;  %v143_v8 = vshrl.u32 %v142_v4, 7  ;;  %v146_v20 = vand.u32 127, %v142_v4  ;;  %216 = vst [vmem:[#allocation8 + $0x18] sm:$0xff] %v187_v36 }
  0x38   :  { %v137_v6 = vsub.f32 %v130_v0, %v132_v2  ;;  %v185_v22 = vld [vmem:[#allocation2] sm:$0xff] }
  0x39   :  { %v293_v5 = vclamps-f32 %v133_v3, 0.2  ;;  %v154_v12 = vsub.s32 0, %v143_v8  ;;  %v158_v13 = vsub.s32 1, %v143_v8  ;;  %vm144_vm1 = vcmp.eq.s32.totalorder %v143_v8, 0  ;;  %v188_v30 = vld [vmem:[%s517_s3] sm:$0xff] }
  0x3a   :  { %v138_v9 = vmul.f32 %v137_v6, %v137_v6  ;;  %vm147_vm2 = vcmp.eq.s32.totalorder %v146_v20, 0  ;;  %v189_v24 = vsub.f32 %v185_v22, %v186_v23  ;;  %s405_s3 = smov [#allocation8]  }
  0x3b   :  { %v136_v7 = vadd.f32 %v293_v5, %v131_v1  ;;  %vm493_vm3 = vmand %vm144_vm1, %vm147_vm2  ;;  %s268_s5 = sshll.u32 %s405_s3, 4  ;;  %s269_s5 = int_to_ptr.vmem [resolvable:$true] %s268_s5 }
  0x3c   :  { %v190_v25 = vmul.f32 1.442695, %v189_v24  ;;  %v197_v35 = vmul.f32 %v189_v24, %v189_v24  ;;  %s373_s18 = scalar_lea.vmem %s269_s5, 640  ;;  %p378_p11 = scmp.lt.s32.totalorder %s269_s5, %s269_s5 }
  0x3d   :  { %v139_v10 = vsub.f32 %v136_v7, %v132_v2  ;;  %p374_p10 = scmp.ne.s32.totalorder %s269_s5, %s373_s18  ;;  %p379_p12 = scmp.lt.s32.totalorder %s373_s18, %s373_s18 }
  0x3e   :  { %305 = vpow2.f32 %v190_v25  ;;  %208 = vst [vmem:[#allocation8 + $0x8] sm:$0xff] %v197_v35 }
  0x3f   :  { %v140_v11 = vmul.f32 %v139_v10, %v139_v10  ;;  %p380_p13 = por %p379_p12, %p378_p11 }
  0x41   :  { %v141_v14 = vmax.f32 %v138_v9, %v140_v11  ;;  %p381_p0 = pnand %p380_p13, %p374_p10 }
  0x43   :  { %v155_v15 = vrot.slane %v141_v14, %v154_v12  ;;  %v159_v16 = vrot.slane %v141_v14, %v158_v13 }
  0x45   :  { %v163_v17 = vsel %vm162_vm0, %v155_v15, 0.0  ;;  %v164_v18 = vsel %vm162_vm0, %v159_v16, 0.0 }
  0x46   :  { %v165_v19 = vadd.f32 %v164_v18, %v163_v17 }
  0x48   :  { %166 = vadd.xlane.f32.xlu0 %v165_v19  ;;  %v306_v26 = vpop.eup %305 }
  0x49   :  { %v193_v27 = vmax.f32 %v306_v26, 0.8  ;;  %v294_v29 = vadd.f32 -1.0, %v306_v26  ;;  %v192_v31 = vmul.f32 %v306_v26, %v188_v30 }
  0x4b   :  { %v194_v28 = vmin.f32 %v193_v27, 1.2  ;;  %v199_v33 = vand.u32 2147483647, %v294_v29 }
  0x4d   :  { %v195_v32 = vmul.f32 %v194_v28, %v188_v30  ;;  %vm200_vm4 = vcmp.gt.f32.partialorder %v199_v33, 0.2 }
  0x4e   :  { %v201_v38 = vsel %vm200_vm4, 1.0, %v404_v37 }
  0x4f   :  { %v196_v34 = vmin.f32 %v192_v31, %v195_v32  ;;  %212 = vst [vmem:[#allocation8 + $0x10] sm:$0xff] %v201_v38 }
  0x51   :  { %204 = vst [vmem:[#allocation8] sm:$0xff] %v196_v34 }
  0xd5   :  { %v167_v39 = vpop.xlane.xlu0 %166 }
  0xd6   :  { %v168_v40 = vrot.slane %v167_v39, 4 }
  0xd8   :  { %v169_v41 = vadd.f32 %v168_v40, %v167_v39 }
  0xda   :  { %v170_v42 = vrot.slane %v169_v41, 2 }
  0xdc   :  { %v171_v43 = vadd.f32 %v170_v42, %v169_v41 }
  0xde   :  { %v172_v44 = vrot.slane %v171_v43, 1 }
  0xe0   :  { %v173_v45 = vadd.f32 %v172_v44, %v171_v43 }
  0xe2   :  { %296 = vpush %v173_v45 }
 0x113   :  { %s297_s6 = spop %296 }
 0x114   :  { %v175_v46 = vstv %s297_s6 }
 0x115   :  { %v176_v47 = vsel %vm493_vm3, %v175_v46, 0.0 }
 0x116   :  { %178 = vst [vmem:[#allocation8 + $0x20] sm:$0xff] %v176_v47 }
 0x117   :  { %384 = shalt.err (!%p381_p0)
}
 0x118   :  { %s385_s21 = scalar_lea.hbm %s521_s7, 640 }
 0x119   :  { %p386_p1 = scmp.ne.s32.totalorder %s521_s7, %s385_s21  ;;  %p389_p2 = scmp.lt.u32.totalorder %s385_s21, %s521_s7 }
 0x11b   :  { %p391_p3 = pnand %p389_p2, %p386_p1 }
 0x11d   :  { %394 = shalt.err (!%p391_p3)
}
 0x11e   :  { %s406_s25 = smov 128   ;;  %s407_s26 = smov 8  }
 0x11f   :  { %274 = dma.vmem_to_hbm [thread:$0]  %s269_s5, 640, %s521_s7, [#allocation4], %s406_s25, %s406_s25, %s407_s26  }
 0x120   :  { %399 = dma.done.wait [#allocation4], 640  }
 0x121   :  { %400 = vsyncadd [#allocation4], 4294966656 }
 0x122   :  { %278 = vsyncpa [#allocation3], 1 }
 0x123   :  { %279 = vsyncpa [#allocation6], 1 }
 0x124   :  { %280 = vsyncpa [#allocation4], 1 }

</bundles_post_ra>
